<compile_context>
chip_gen: v7x
topology: tpu7x:2x2x1
jax: 0.10.0
libtpu: 0.0.40
codegen_flags: <defaults>
</compile_context>

<pallas_src>
import jax
import jax.numpy as jnp
from jax.experimental import pallas as pl
from jax.experimental.pallas import tpu as pltpu


def _round_up(n: int, m: int) -> int:
    return ((n + m - 1) // m) * m


# ----------------------------------------------------------------------------
# Pallas kernel: fused (encoder+core-layer-1) matmul -> ReLU -> core-layer-2
# ----------------------------------------------------------------------------
def _fewshot_forward_kernel(x_ref, wf_ref, bf_ref, w2_ref, b2_ref, o_ref):
    # x  : (TB, N_IN)     f32
    # wf : (N_IN, H)      f32   (= We^T @ W1^T, fused offline)
    # bf : (1, H)         f32   (= be @ W1^T + b1)
    # w2 : (H, N_OUT)     f32   (= W2^T)
    # b2 : (1, N_OUT)     f32
    # o  : (TB, N_OUT)    f32
    h = jnp.dot(x_ref[...], wf_ref[...], preferred_element_type=jnp.float32)
    h = jnp.maximum(h + bf_ref[...], 0.0)                            # (TB, H)
    y = jnp.dot(h, w2_ref[...], preferred_element_type=jnp.float32)
    o_ref[...] = (y + b2_ref[...]).astype(o_ref.dtype)               # (TB, N_OUT)


# ----------------------------------------------------------------------------
# One-time parameter preprocessing (hoisted out of the forward path)
# ----------------------------------------------------------------------------
def prepare_fused_params(params):
    """Fuse the encoder Linear into core layer 1 and lay everything out in
    (in_features, out_features) order.  No lane padding (review: the padded
    output dominated HBM traffic; f32 I/O contract is kept).

    params: PyTorch-convention weights:
        we (N_ENC, N_IN), be (N_ENC,)   -- problem.x_encoder
        w1 (H, N_ENC),    b1 (H,)       -- core layer 1
        w2 (N_OUT, H),    b2 (N_OUT,)   -- core layer 2
    """
    we = jnp.asarray(params["we"], jnp.float32)
    be = jnp.asarray(params["be"], jnp.float32)
    w1 = jnp.asarray(params["w1"], jnp.float32)
    b1 = jnp.asarray(params["b1"], jnp.float32)
    w2 = jnp.asarray(params["w2"], jnp.float32)
    b2 = jnp.asarray(params["b2"], jnp.float32)

    # Exact fusion (FP summation order differs from unfused reference, but is
    # well within tolerance for these sizes):
    #   (x @ We^T + be) @ W1^T + b1 == x @ (We^T @ W1^T) + (be @ W1^T + b1)
    w_fused = we.T @ w1.T                      # (N_IN, H)
    b_fused = (be @ w1.T + b1)[None, :]        # (1, H)

    return {
        "w_fused": w_fused,
        "b_fused": b_fused,
        "w2": w2.T,                            # (H, N_OUT)
        "b2": b2[None, :],                     # (1, N_OUT)
    }


# ----------------------------------------------------------------------------
# Forward wrapper: batch-tiled, weight-resident pallas_call (no pad / slice)
# ----------------------------------------------------------------------------
def _pick_batch_tile(B: int, max_tile: int) -> int:
    """Batch tile: multiple of 8 sublanes, capped at max_tile rows, and split
    into an even number of balanced blocks when B > 8 so the batch axis can
    shard across both TensorCores on v7x (no-op on v5e/v6e)."""
    if B <= 8:
        return B  # block sublane dim == full array dim -> legal
    n_blocks = max(2, 2 * pl.cdiv(pl.cdiv(B, max_tile), 2))
    return min(_round_up(pl.cdiv(B, n_blocks), 8), _round_up(B, 8))


def torch_model_module_forward(x, fused, *, max_tile=4096):
    """x: (B, N_IN) float32 ; fused: output of prepare_fused_params.
    Returns (B, N_OUT) float32."""
    x = jnp.asarray(x, jnp.float32)
    B, n_in = x.shape
    h = fused["w_fused"].shape[1]
    n_out = fused["w2"].shape[1]

    tb = _pick_batch_tile(B, max_tile)
    grid = (pl.cdiv(B, tb),)

    out = pl.pallas_call(
        _fewshot_forward_kernel,
        out_shape=jax.ShapeDtypeStruct((B, n_out), jnp.float32),
        grid_spec=pltpu.PrefetchScalarGridSpec(
            num_scalar_prefetch=0,
            grid=grid,
            in_specs=[
                pl.BlockSpec((tb, n_in), lambda i: (i, 0)),       # x tile
                pl.BlockSpec((n_in, h), lambda i: (0, 0)),        # fused weight (resident)
                pl.BlockSpec((1, h), lambda i: (0, 0)),           # fused bias   (resident)
                pl.BlockSpec((h, n_out), lambda i: (0, 0)),       # W2^T         (resident)
                pl.BlockSpec((1, n_out), lambda i: (0, 0)),       # b2           (resident)
            ],
            out_specs=pl.BlockSpec((tb, n_out), lambda i: (i, 0)),
        ),
        compiler_params=pltpu.CompilerParams(
            dimension_semantics=("parallel",),      # megacore shard over batch (v7x)
            vmem_limit_bytes=64 * 1024 * 1024,
        ),
    )(x, fused["w_fused"], fused["b_fused"], fused["w2"], fused["b2"])

    # decode_output: y_decoder is None -> identity.
    return out


# ----------------------------------------------------------------------------
# Pure-JAX reference (unfused original math) for correctness check
# ----------------------------------------------------------------------------
def _reference_forward(x, params):
    xenc = x @ params["we"].T + params["be"]
    hid = jnp.maximum(xenc @ params["w1"].T + params["b1"], 0.0)
    return hid @ params["w2"].T + params["b2"]


if __name__ == "__main__":
    # Small shapes consistent with the module: 1-D inputs/outputs, batched.
    B, N_IN, N_ENC, H, N_OUT = 2, 8, 32, 32, 4

    key = jax.random.PRNGKey(0)
    kx, kwe, kbe, kw1, kb1, kw2, kb2 = jax.random.split(key, 7)

    x = jax.random.normal(kx, (B, N_IN), dtype=jnp.float32)

    # Deterministic synthetic parameters (PyTorch nn.Linear shape convention).
    params = {
        "we": jax.random.normal(kwe, (N_ENC, N_IN), dtype=jnp.float32) * 0.1,
        "be": jax.random.normal(kbe, (N_ENC,), dtype=jnp.float32) * 0.1,
        "w1": jax.random.normal(kw1, (H, N_ENC), dtype=jnp.float32) * 0.1,
        "b1": jax.random.normal(kb1, (H,), dtype=jnp.float32) * 0.1,
        "w2": jax.random.normal(kw2, (N_OUT, H), dtype=jnp.float32) * 0.1,
        "b2": jax.random.normal(kb2, (N_OUT,), dtype=jnp.float32) * 0.1,
    }

    fused = prepare_fused_params(params)          # one-time preprocessing
    y = torch_model_module_forward(x, fused)
    y = jax.block_until_ready(y)

    y_ref = _reference_forward(x, params)
    assert y.shape == (B, N_OUT)
    assert jnp.allclose(y, y_ref, atol=1e-4, rtol=1e-4), "mismatch vs reference"

    # Larger batch: exercises multi-step grid, ragged last block, no pad/slice.
    B_big = 2500
    x_big = jax.random.normal(jax.random.PRNGKey(1), (B_big, N_IN), dtype=jnp.float32)
    y_big = jax.block_until_ready(torch_model_module_forward(x_big, fused))
    y_big_ref = _reference_forward(x_big, params)
    assert y_big.shape == (B_big, N_OUT)
    assert jnp.allclose(y_big, y_big_ref, atol=1e-4, rtol=1e-4), "mismatch (big batch)"

    # Tiny non-multiple-of-8 batch (single ragged block).
    B_odd = 5
    x_odd = jax.random.normal(jax.random.PRNGKey(2), (B_odd, N_IN), dtype=jnp.float32)
    y_odd = jax.block_until_ready(torch_model_module_forward(x_odd, fused))
    assert jnp.allclose(y_odd, _reference_forward(x_odd, params), atol=1e-4, rtol=1e-4)

    # TODO(synk): forward_core_fewshot_loss / condition_core are abstract
    # (raise NotImplementedError in the base class) and have no forward-pass
    # semantics to translate.
    print("KERNEL_OK")
</pallas_src>

<mosaic_0001>
module attributes {stable_mosaic.version = 11 : i64} {
  func.func @_fewshot_forward_kernel(%arg0: i32, %arg1: memref<2x8xf32, #tpu.memory_space<vmem>>, %arg2: memref<8x32xf32, #tpu.memory_space<vmem>>, %arg3: memref<1x32xf32, #tpu.memory_space<vmem>>, %arg4: memref<32x4xf32, #tpu.memory_space<vmem>>, %arg5: memref<1x4xf32, #tpu.memory_space<vmem>>, %arg6: memref<2x4xf32, #tpu.memory_space<vmem>>) attributes {dimension_semantics = [#tpu.dimension_semantics<parallel>], iteration_bounds = array<i64: 1>, scalar_prefetch = 0 : i64, scratch_operands = 0 : i64, tpu.core_type = #tpu.core_type<tc>, window_params = [{transform_indices = @transform_0, window_bounds = array<i64: 2, 8>}, {pipeline_mode = #tpu.pipeline_mode<synchronous>, transform_indices = @transform_1, window_bounds = array<i64: 8, 32>}, {pipeline_mode = #tpu.pipeline_mode<synchronous>, transform_indices = @transform_2, window_bounds = array<i64: 1, 32>}, {pipeline_mode = #tpu.pipeline_mode<synchronous>, transform_indices = @transform_3, window_bounds = array<i64: 32, 4>}, {pipeline_mode = #tpu.pipeline_mode<synchronous>, transform_indices = @transform_4, window_bounds = array<i64: 1, 4>}, {transform_indices = @transform_5, window_bounds = array<i64: 2, 4>}]} {
    %c0 = arith.constant 0 : index
    %c0_0 = arith.constant 0 : index
    %0 = vector.load %arg1[%c0, %c0_0] : memref<2x8xf32, #tpu.memory_space<vmem>>, vector<2x8xf32>
    %c0_1 = arith.constant 0 : index
    %c0_2 = arith.constant 0 : index
    %1 = vector.load %arg2[%c0_1, %c0_2] : memref<8x32xf32, #tpu.memory_space<vmem>>, vector<8x32xf32>
    %cst = arith.constant dense<0.000000e+00> : vector<2x32xf32>
    %2 = tpu.matmul %0, %1, %cst {dimension_numbers = #tpu.dot_dimension_numbers<[1], [0], [0], [1], [0, 0, 1, 1], [], []>} : vector<2x8xf32>, vector<8x32xf32>, vector<2x32xf32> -> vector<2x32xf32>
    %c0_3 = arith.constant 0 : index
    %c0_4 = arith.constant 0 : index
    %3 = vector.load %arg3[%c0_3, %c0_4] : memref<1x32xf32, #tpu.memory_space<vmem>>, vector<1x32xf32>
    %4 = vector.broadcast %3 : vector<1x32xf32> to vector<2x32xf32>
    %5 = arith.addf %2, %4 : vector<2x32xf32>
    %cst_5 = arith.constant 0.000000e+00 : f32
    %6 = vector.broadcast %cst_5 : f32 to vector<2x32xf32>
    %7 = arith.maximumf %5, %6 : vector<2x32xf32>
    %c0_6 = arith.constant 0 : index
    %c0_7 = arith.constant 0 : index
    %8 = vector.load %arg4[%c0_6, %c0_7] : memref<32x4xf32, #tpu.memory_space<vmem>>, vector<32x4xf32>
    %cst_8 = arith.constant dense<0.000000e+00> : vector<2x4xf32>
    %9 = tpu.matmul %7, %8, %cst_8 {dimension_numbers = #tpu.dot_dimension_numbers<[1], [0], [0], [1], [0, 0, 1, 1], [], []>} : vector<2x32xf32>, vector<32x4xf32>, vector<2x4xf32> -> vector<2x4xf32>
    %c0_9 = arith.constant 0 : index
    %c0_10 = arith.constant 0 : index
    %10 = vector.load %arg5[%c0_9, %c0_10] : memref<1x4xf32, #tpu.memory_space<vmem>>, vector<1x4xf32>
    %11 = vector.broadcast %10 : vector<1x4xf32> to vector<2x4xf32>
    %12 = arith.addf %9, %11 : vector<2x4xf32>
    %c0_11 = arith.constant 0 : index
    %c0_12 = arith.constant 0 : index
    %13 = vector.load %arg6[%c0_11, %c0_12] : memref<2x4xf32, #tpu.memory_space<vmem>>, vector<2x4xf32>
    tpu.vector_store %arg6[%c0_11, %c0_12], %12 {strides = array<i32>} : memref<2x4xf32, #tpu.memory_space<vmem>>, vector<2x4xf32>,
    return
  }
  func.func @transform_0(%arg0: i32) -> (i32, i32) {
    %c0_i32 = arith.constant 0 : i32
    %c0_i32_0 = arith.constant 0 : i32
    return %arg0, %c0_i32 : i32, i32
  }
  func.func @transform_1(%arg0: i32) -> (i32, i32) {
    %c0_i32 = arith.constant 0 : i32
    %c0_i32_0 = arith.constant 0 : i32
    %c0_i32_1 = arith.constant 0 : i32
    return %c0_i32, %c0_i32_0 : i32, i32
  }
  func.func @transform_2(%arg0: i32) -> (i32, i32) {
    %c0_i32 = arith.constant 0 : i32
    %c0_i32_0 = arith.constant 0 : i32
    %c0_i32_1 = arith.constant 0 : i32
    return %c0_i32, %c0_i32_0 : i32, i32
  }
  func.func @transform_3(%arg0: i32) -> (i32, i32) {
    %c0_i32 = arith.constant 0 : i32
    %c0_i32_0 = arith.constant 0 : i32
    %c0_i32_1 = arith.constant 0 : i32
    return %c0_i32, %c0_i32_0 : i32, i32
  }
  func.func @transform_4(%arg0: i32) -> (i32, i32) {
    %c0_i32 = arith.constant 0 : i32
    %c0_i32_0 = arith.constant 0 : i32
    %c0_i32_1 = arith.constant 0 : i32
    return %c0_i32, %c0_i32_0 : i32, i32
  }
  func.func @transform_5(%arg0: i32) -> (i32, i32) {
    %c0_i32 = arith.constant 0 : i32
    %c0_i32_0 = arith.constant 0 : i32
    return %arg0, %c0_i32 : i32, i32
  }
}

</mosaic_0001>

<bundles_post_ra>
// kernel: tpu_custom_call.1
= control target key start
LH: loop header
LB: loop body
LE: loop exit
PB: predicated region body
PF: predicated region fallthrough
CT: control target
= control target key end

     0   :  { %10 = vsyncpa [#allocation3], 0  ;;  %s573_s0 = inlined_call_operand.hbm [shape: f32[2,8], index: 0, kind: input, shape index: {}]   ;;  %s574_s1 = inlined_call_operand.hbm [shape: f32[8,32], index: 1, kind: input, shape index: {}]   ;;  %s575_s2 = inlined_call_operand.hbm [shape: f32[1,32], index: 2, kind: input, shape index: {}]   ;;  %s576_s3 = inlined_call_operand.hbm [shape: f32[32,4], index: 3, kind: input, shape index: {}]   ;;  %s577_s4 = inlined_call_operand.hbm [shape: f32[1,4], index: 4, kind: input, shape index: {}]   ;;  %s578_s5 = inlined_call_operand.hbm [shape: f32[2,4], index: 5, kind: output, shape index: {}]  }
   0x1   :  { %11 = vsyncpa [#allocation6], 0 }
   0x2   :  { %12 = vsyncpa [#allocation9], 0 }
   0x3   :  { %13 = vsyncpa [#allocation4], 0  ;;  %s453_s18 = smov [#allocation5]   ;;  %s454_s20 = smov [#allocation8]  }
   0x4   :  { %s30_s19 = sshll.u32 %s453_s18, 4  ;;  %s49_s21 = sshll.u32 %s454_s20, 4  ;;  %s31_s19 = int_to_ptr.vmem [resolvable:$true] %s30_s19  ;;  %s494_s21 = int_to_ptr.vmem [resolvable:$true] %s49_s21 }
   0x5   :  { %s313_s24 = scalar_lea.hbm %s574_s1, 128 }
   0x6   :  { %p314_p0 = scmp.ne.s32.totalorder %s574_s1, %s313_s24  ;;  %p317_p1 = scmp.lt.u32.totalorder %s313_s24, %s574_s1 }
   0x8   :  { %p319_p2 = pnand %p317_p1, %p314_p0 }
   0xa   :  { %322 = shalt.err (!%p319_p2)
}
   0xb   :  { %s323_s29 = scalar_lea.vmem %s31_s19, 128  ;;  %p328_p4 = scmp.lt.s32.totalorder %s31_s19, %s31_s19 }
   0xc   :  { %p324_p3 = scmp.ne.s32.totalorder %s31_s19, %s323_s29  ;;  %p329_p5 = scmp.lt.s32.totalorder %s323_s29, %s323_s29 }
   0xe   :  { %p330_p6 = por %p329_p5, %p328_p4 }
  0x10   :  { %p331_p7 = pnand %p330_p6, %p324_p3 }
  0x12   :  { %334 = shalt.err (!%p331_p7)
}
  0x13   :  { %33 = dma.hbm_to_vmem [thread:$0]  %s574_s1, 128, %s31_s19, [#allocation6]  }
  0x14   :  { %s335_s9 = scalar_lea.hbm %s576_s3, 512 }
  0x15   :  { %p336_p8 = scmp.ne.s32.totalorder %s576_s3, %s335_s9  ;;  %p339_p9 = scmp.lt.u32.totalorder %s335_s9, %s576_s3 }
  0x17   :  { %p341_p10 = pnand %p339_p9, %p336_p8 }
  0x19   :  { %344 = shalt.err (!%p341_p10)
}
  0x1a   :  { %s345_s14 = scalar_lea.vmem %s494_s21, 512  ;;  %p350_p12 = scmp.lt.s32.totalorder %s494_s21, %s494_s21 }
  0x1b   :  { %p346_p11 = scmp.ne.s32.totalorder %s494_s21, %s345_s14  ;;  %p351_p13 = scmp.lt.s32.totalorder %s345_s14, %s345_s14 }
  0x1d   :  { %p352_p0 = por %p351_p13, %p350_p12 }
  0x1f   :  { %p353_p1 = pnand %p352_p0, %p346_p11 }
  0x21   :  { %356 = shalt.err (!%p353_p1)
}
  0x22   :  { %s455_s1 = smov 128   ;;  %s456_s15 = smov 8  }
  0x23   :  { %55 = dma.hbm_to_vmem [thread:$0]  %s576_s3, 512, %s494_s21, [#allocation9], %s455_s1, %s455_s1, %s456_s15  }
  0x24   :  { %s457_s18 = smov [#allocation2]   ;;  %s458_s20 = smov [#allocation7]  }
  0x25   :  { %s20_s19 = sshll.u32 %s457_s18, 4  ;;  %s40_s22 = sshll.u32 %s458_s20, 4  ;;  %s21_s19 = int_to_ptr.vmem [resolvable:$true] %s20_s19  ;;  %s41_s22 = int_to_ptr.vmem [resolvable:$true] %s40_s22 }
  0x26   :  { %s357_s25 = scalar_lea.hbm %s573_s0, 32 }
  0x27   :  { %p358_p2 = scmp.ne.s32.totalorder %s573_s0, %s357_s25  ;;  %p361_p3 = scmp.lt.u32.totalorder %s357_s25, %s573_s0 }
  0x29   :  { %p363_p4 = pnand %p361_p3, %p358_p2 }
  0x2b   :  { %366 = shalt.err (!%p363_p4)
}
  0x2c   :  { %s367_s3 = scalar_lea.vmem %s21_s19, 32  ;;  %p372_p6 = scmp.lt.s32.totalorder %s21_s19, %s21_s19 }
  0x2d   :  { %p368_p5 = scmp.ne.s32.totalorder %s21_s19, %s367_s3  ;;  %p373_p7 = scmp.lt.s32.totalorder %s367_s3, %s367_s3 }
  0x2f   :  { %p374_p8 = por %p373_p7, %p372_p6 }
  0x31   :  { %p375_p9 = pnand %p374_p8, %p368_p5 }
  0x33   :  { %378 = shalt.err (!%p375_p9)
}
  0x34   :  { %23 = dma.hbm_to_vmem [thread:$0]  %s573_s0, 32, %s21_s19, [#allocation3]  }
  0x35   :  { %s379_s8 = scalar_lea.hbm %s575_s2, 16 }
  0x36   :  { %p380_p10 = scmp.ne.s32.totalorder %s575_s2, %s379_s8  ;;  %p383_p11 = scmp.lt.u32.totalorder %s379_s8, %s575_s2 }
  0x38   :  { %p385_p12 = pnand %p383_p11, %p380_p10 }
  0x3a   :  { %388 = shalt.err (!%p385_p12)
}
  0x3b   :  { %s389_s13 = scalar_lea.vmem %s41_s22, 16  ;;  %s393_s14 = scalar_lea.vmem %s41_s22, 32 }
  0x3c   :  { %p390_p13 = scmp.ne.s32.totalorder %s41_s22, %s389_s13  ;;  %p394_p0 = scmp.lt.s32.totalorder %s41_s22, %s41_s22 }
  0x3d   :  { %p395_p1 = scmp.lt.s32.totalorder %s393_s14, %s389_s13 }
  0x3f   :  { %p396_p2 = por %p395_p1, %p394_p0 }
  0x41   :  { %p397_p3 = pnand %p396_p2, %p390_p13 }
  0x43   :  { %400 = shalt.err (!%p397_p3)
}
  0x44   :  { %43 = dma.hbm_to_vmem [thread:$0]  %s575_s2, 16, %s41_s22, [#allocation6]  }
  0x45   :  { %s459_s15 = smov [#allocation10]   ;;  %s401_s19 = scalar_lea.hbm %s577_s4, 16 }
  0x46   :  { %s62_s16 = sshll.u32 %s459_s15, 4  ;;  %p402_p4 = scmp.ne.s32.totalorder %s577_s4, %s401_s19  ;;  %s63_s16 = int_to_ptr.vmem [resolvable:$true] %s62_s16 }
  0x47   :  { %p405_p5 = scmp.lt.u32.totalorder %s401_s19, %s577_s4 }
  0x49   :  { %p407_p6 = pnand %p405_p5, %p402_p4 }
  0x4b   :  { %410 = shalt.err (!%p407_p6)
}
  0x4c   :  { %s411_s26 = scalar_lea.vmem %s63_s16, 16  ;;  %s415_s2 = scalar_lea.vmem %s63_s16, 32 }
  0x4d   :  { %p412_p7 = scmp.ne.s32.totalorder %s63_s16, %s411_s26  ;;  %p416_p8 = scmp.lt.s32.totalorder %s63_s16, %s63_s16 }
  0x4e   :  { %p417_p9 = scmp.lt.s32.totalorder %s415_s2, %s411_s26 }
  0x50   :  { %p418_p10 = por %p417_p9, %p416_p8 }
  0x52   :  { %p419_p11 = pnand %p418_p10, %p412_p7 }
  0x54   :  { %422 = shalt.err (!%p419_p11)
}
  0x55   :  { %65 = dma.hbm_to_vmem [thread:$0]  %s577_s4, 16, %s63_s16, [#allocation9]  }
  0x56   :  { %445 = dma.done.wait [#allocation3], 32  }
  0x57   :  { %446 = vsyncadd [#allocation3], 4294967264 }
  0x58   :  { %447 = dma.done.wait [#allocation6], 144  }
  0x59   :  { %448 = vsyncadd [#allocation6], 4294967152 }
  0x5a   :  { %449 = dma.done.wait [#allocation9], 528  }
  0x5b   :  { %450 = vsyncadd [#allocation9], 4294966768  ;;  %v460_v0 = vmov 0.0   ;;  %vm461_vm0 = vmmov 0   ;;  %v462_v1 = vmov 0.0|0.0   ;;  %vm90_vm1 = vcmask 64512  }
  0x5c   :  { %280 = vmatprep.subr.mxu0 %v460_v0  ;;  %282 = vmatprep.mubr.msk.f32.mxu0 %vm461_vm0, %v460_v0  ;;  %v82_v2 = vld [vmem:[#allocation5] sm:$0xff]  ;;  %v81_v3 = vld [vmem:[#allocation2] sm:$0x3]  ;;  %v165_v4 = vld [vmem:[#allocation8] sm:$0xff]  ;;  %vm176_vm2 = vcmask 261120   ;;  %s463_s4 = smov [#allocation11]  }
  0x5d   :  { %296 = vmatprep.subr.bf16.mxu1 %v462_v1  ;;  %293 = vmatprep.mubr.msk.f32.mxu1 %vm461_vm0, %v460_v0  ;;  %v166_v5 = vld [vmem:[#allocation8 + $0x8] sm:$0xff]  ;;  %v167_v7 = vld [vmem:[#allocation8 + $0x10] sm:$0xff]  ;;  %v168_v8 = vld [vmem:[#allocation8 + $0x18] sm:$0xff]  ;;  %s258_s28 = sshll.u32 %s463_s4, 4  ;;  %vm250_vm3 = vcmask 25600   ;;  %s259_s28 = int_to_ptr.vmem [resolvable:$true] %s258_s28 }
  0x5e   :  { %281 = vmatpush3.msra.mxu0 %v82_v2  ;;  %v297_v6 = vpack.c.bf16 %v166_v5, %v165_v4  ;;  %v300_v9 = vpack.c.bf16 %v168_v8, %v167_v7  ;;  %v269_v10 = vld [vmem:[#allocation7] ss:$0 sm:$0xff]  ;;  %v271_v15 = vld [vmem:[#allocation10] ss:$0 sm:$0xff]  ;;  %s423_s29 = scalar_lea.vmem %s259_s28, 32  ;;  %p428_p13 = scmp.lt.s32.totalorder %s259_s28, %s259_s28 }
  0x5f   :  { %283 = vmatmul.mubr.msk.f32.vlgmr.msra.gmra.mrb[0].mxu0 %vm90_vm1, %v81_v3  ;;  %p424_p12 = scmp.ne.s32.totalorder %s259_s28, %s423_s29  ;;  %p429_p0 = scmp.lt.s32.totalorder %s423_s29, %s423_s29 }
  0x60   :  { %298 = vmatpush3.bf16.msra.mxu1 %v297_v6 }
  0x61   :  { %299 = vmatprep.subr.bf16.mxu1 %v462_v1  ;;  %p430_p1 = por %p429_p0, %p428_p13 }
  0x63   :  { %p431_p2 = pnand %p430_p1, %p424_p12 }
  0x64   :  { %301 = vmatpush3.bf16.msra.mxu1 %v300_v9 }
 0x132   :  { %v160_v11 = vpop.f32.mrb[0].mxu0 }
 0x133   :  { %v161_v12 = vadd.f32 %v269_v10, %v160_v11  ;;  %v284_v13 = vpop.f32.mrb[1].mxu0 }
 0x135   :  { %v164_v14 = vmax.f32 %v161_v12, 0.0 }
 0x137   :  { %294 = vmatmul.mubr.msk.f32.vlgmr.msra.gmra.mrb[0].mxu1 %vm176_vm2, %v164_v14 }
 0x20a   :  { %v246_v16 = vpop.f32.mrb[0].mxu1 }
 0x20b   :  { %v247_v17 = vadd.f32 %v271_v15, %v246_v16  ;;  %v295_v18 = vpop.f32.mrb[1].mxu1 }
 0x20d   :  { %251 = vst.msk [vmem:[#allocation11] sm:$0x3] %vm250_vm3, %v247_v17 }
 0x20e   :  { %434 = shalt.err (!%p431_p2)
}
 0x20f   :  { %s435_s30 = scalar_lea.hbm %s578_s5, 32 }
 0x210   :  { %p436_p3 = scmp.ne.s32.totalorder %s578_s5, %s435_s30  ;;  %p439_p4 = scmp.lt.u32.totalorder %s435_s30, %s578_s5 }
 0x212   :  { %p441_p5 = pnand %p439_p4, %p436_p3 }
 0x214   :  { %444 = shalt.err (!%p441_p5)
}
 0x215   :  { %261 = dma.vmem_to_hbm [thread:$0]  %s259_s28, 32, %s578_s5, [#allocation4]  }
 0x216   :  { %451 = dma.done.wait [#allocation4], 32  }
 0x217   :  { %452 = vsyncadd [#allocation4], 4294967264 }
 0x218   :  { %265 = vsyncpa [#allocation3], 1 }
 0x219   :  { %266 = vsyncpa [#allocation6], 1 }
 0x21a   :  { %267 = vsyncpa [#allocation9], 1 }
 0x21b   :  { %268 = vsyncpa [#allocation4], 1 }

</bundles_post_ra>
